<compile_context>
chip_gen: v6e
topology: v6e:2x2x1
jax: 0.10.0
libtpu: 0.0.40
codegen_flags: <defaults>
</compile_context>

<pallas_src>
import functools
import math

import jax
import jax.numpy as jnp
from jax import lax
from jax.experimental import pallas as pl
from jax.experimental.pallas import tpu as pltpu


def _round_up(v, mult):
    return ((v + mult - 1) // mult) * mult


def add_margin_kernel(x_ref, w_ref, lab_ref, o_ref, *, s, m, tile_c):
    """Compute one (TILE_B, TILE_C) output tile: s * (cos(theta) - m * one_hot)."""
    j = pl.program_id(1)  # class-tile index (class axis is innermost / fastest)

    x = x_ref[...].astype(jnp.float32)   # (TILE_B, D)
    w = w_ref[...].astype(jnp.float32)   # (TILE_C, D)

    # F.normalize(.., dim=1, eps=1e-12):  x / max(||x||, eps)
    #   == x * rsqrt(max(sum(x^2), eps^2));  rsqrt goes to the EUP slot (no divides).
    x_inv = lax.rsqrt(jnp.maximum(jnp.sum(x * x, axis=-1, keepdims=True), 1e-24))
    w_inv = lax.rsqrt(jnp.maximum(jnp.sum(w * w, axis=-1, keepdims=True), 1e-24))

    # bf16 MXU operands (2-4x matmul throughput, half the streamed bytes), f32 acc.
    xn = (x * x_inv).astype(jnp.bfloat16)
    wn = (w * w_inv).astype(jnp.bfloat16)

    # cosine = xn @ wn.T without forming the transpose: contract dim 1 of both.
    cosine = lax.dot_general(
        xn, wn,
        dimension_numbers=(((1,), (1,)), ((), ())),
        preferred_element_type=jnp.float32)          # (TILE_B, TILE_C) f32

    tb, tc = cosine.shape
    class_ids = j * tile_c + lax.broadcasted_iota(jnp.int32, (tb, tc), 1)
    labels = lab_ref[...]                            # (TILE_B, 1) int32

    scaled = s * cosine
    # s * (one_hot*(cos - m) + (1-one_hot)*cos)  ==  where(hit, s*cos - s*m, s*cos)
    o_ref[...] = jnp.where(class_ids == labels, scaled - s * m, scaled).astype(o_ref.dtype)


def add_margin_product(x, weight, label, *, s=30.0, m=0.4, tile_b=128, tile_c=512):
    """AddMarginProduct.forward(x, label) with weight given explicitly."""
    B, D = x.shape
    C, D2 = weight.shape
    assert D == D2, "in_features mismatch between input and weight"

    # Tile sizes: lane-dense class tiles (multiple of 128), sublane-aligned batch tiles.
    tb = min(tile_b, _round_up(B, 8))
    tc = min(tile_c, _round_up(C, 128))

    # Pad so the grid divides exactly (zero rows normalize to zero -> harmless,
    # padded class columns are sliced off below and can never match a label).
    B_pad = _round_up(B, tb)
    C_pad = _round_up(C, tc)

    x_p = x if B_pad == B else jnp.pad(x, ((0, B_pad - B), (0, 0)))
    w_p = weight if C_pad == C else jnp.pad(weight, ((0, C_pad - C), (0, 0)))
    lab = label.reshape(-1, 1).astype(jnp.int32)
    lab_p = lab if B_pad == B else jnp.pad(lab, ((0, B_pad - B), (0, 0)))

    grid = (B_pad // tb, C_pad // tc)   # class axis innermost: W streams, x stays resident

    kernel = functools.partial(add_margin_kernel, s=float(s), m=float(m), tile_c=tc)

    out = pl.pallas_call(
        kernel,
        out_shape=jax.ShapeDtypeStruct((B_pad, C_pad), jnp.float32),
        grid=grid,
        in_specs=[
            pl.BlockSpec((tb, D), lambda i, j: (i, 0)),   # x tile
            pl.BlockSpec((tc, D), lambda i, j: (j, 0)),   # W tile (streamed over classes)
            pl.BlockSpec((tb, 1), lambda i, j: (i, 0)),   # labels for this batch tile
        ],
        out_specs=pl.BlockSpec((tb, tc), lambda i, j: (i, j)),
        compiler_params=pltpu.CompilerParams(
            dimension_semantics=("parallel", "parallel")),  # no reduction axis; v7x 2-TC sharding
    )(x_p, w_p, lab_p)

    return out[:B, :C]


def xavier_uniform(key, out_features, in_features):
    # matches nn.init.xavier_uniform_ for a 2-D (out, in) weight
    bound = math.sqrt(6.0 / (in_features + out_features))
    return jax.random.uniform(
        key, (out_features, in_features), jnp.float32, minval=-bound, maxval=bound
    )


if __name__ == "__main__":
    # Small demo shapes (C chosen so the class axis is padded AND multi-tiled with tile_c=128).
    B, D, C = 8, 32, 200          # batch, in_features, out_features
    s_param, m_param = 30.0, 0.4

    key = jax.random.PRNGKey(0)
    kx, kw, kl = jax.random.split(key, 3)
    x = jax.random.normal(kx, (B, D), jnp.float32)
    weight = xavier_uniform(kw, C, D)
    label = jax.random.randint(kl, (B,), 0, C, jnp.int32)

    out = add_margin_product(x, weight, label, s=s_param, m=m_param, tile_b=8, tile_c=128)
    out = jax.block_until_ready(out)
    assert out.shape == (B, C)

    # ---- reference checks ----
    xn = x / jnp.maximum(jnp.linalg.norm(x, axis=1, keepdims=True), 1e-12)
    wn = weight / jnp.maximum(jnp.linalg.norm(weight, axis=1, keepdims=True), 1e-12)
    one_hot = jax.nn.one_hot(label, C, dtype=jnp.float32)

    # Tight check: mirror the kernel's bf16 operands / f32 accumulation.
    cos_bf16 = jnp.dot(xn.astype(jnp.bfloat16), wn.astype(jnp.bfloat16).T,
                       preferred_element_type=jnp.float32)
    ref_bf16 = s_param * (one_hot * (cos_bf16 - m_param) + (1.0 - one_hot) * cos_bf16)
    assert jnp.allclose(out, ref_bf16, atol=1e-3, rtol=1e-3)

    # Loose sanity check against the pure-f32 PyTorch-equivalent math
    # (bf16 matmul operands cost ~1e-2..1e-1 absolute on the s=30-scaled logits).
    cos_f32 = xn @ wn.T
    ref_f32 = s_param * (one_hot * (cos_f32 - m_param) + (1.0 - one_hot) * cos_f32)
    assert jnp.allclose(out, ref_f32, atol=3e-1)

    print("KERNEL_OK")
</pallas_src>

<mosaic_0001>
module attributes {stable_mosaic.version = 11 : i64} {
  func.func @add_margin_kernel(%arg0: i32, %arg1: i32, %arg2: memref<8x32xf32, #tpu.memory_space<vmem>>, %arg3: memref<128x32xf32, #tpu.memory_space<vmem>>, %arg4: memref<8x1xi32, #tpu.memory_space<vmem>>, %arg5: memref<8x128xf32, #tpu.memory_space<vmem>>) attributes {dimension_semantics = [#tpu.dimension_semantics<parallel>, #tpu.dimension_semantics<parallel>], iteration_bounds = array<i64: 1, 2>, scalar_prefetch = 0 : i64, scratch_operands = 0 : i64, tpu.core_type = #tpu.core_type<tc>, window_params = [{transform_indices = @transform_0, window_bounds = array<i64: 8, 32>}, {transform_indices = @transform_1, window_bounds = array<i64: 128, 32>}, {transform_indices = @transform_2, window_bounds = array<i64: 8, 1>}, {transform_indices = @transform_3, window_bounds = array<i64: 8, 128>}]} {
    %c0 = arith.constant 0 : index
    %c0_0 = arith.constant 0 : index
    %0 = vector.load %arg2[%c0, %c0_0] : memref<8x32xf32, #tpu.memory_space<vmem>>, vector<8x32xf32>
    %c0_1 = arith.constant 0 : index
    %c0_2 = arith.constant 0 : index
    %1 = vector.load %arg3[%c0_1, %c0_2] : memref<128x32xf32, #tpu.memory_space<vmem>>, vector<128x32xf32>
    %2 = arith.mulf %0, %0 : vector<8x32xf32>
    %cst = arith.constant dense<0.000000e+00> : vector<8xf32>
    %3 = vector.multi_reduction <add>, %2, %cst [1] : vector<8x32xf32> to vector<8xf32>
    %4 = vector.shape_cast %3 : vector<8xf32> to vector<8x1xf32>
    %cst_3 = arith.constant 1.000000e-24 : f32
    %5 = vector.broadcast %cst_3 : f32 to vector<8x1xf32>
    %6 = arith.maximumf %4, %5 : vector<8x1xf32>
    %7 = math.rsqrt %6 : vector<8x1xf32>
    %8 = arith.mulf %1, %1 : vector<128x32xf32>
    %cst_4 = arith.constant dense<0.000000e+00> : vector<128xf32>
    %9 = vector.multi_reduction <add>, %8, %cst_4 [1] : vector<128x32xf32> to vector<128xf32>
    %10 = vector.shape_cast %9 : vector<128xf32> to vector<128x1xf32>
    %cst_5 = arith.constant 1.000000e-24 : f32
    %11 = vector.broadcast %cst_5 : f32 to vector<128x1xf32>
    %12 = arith.maximumf %10, %11 : vector<128x1xf32>
    %13 = math.rsqrt %12 : vector<128x1xf32>
    %14 = vector.broadcast %7 : vector<8x1xf32> to vector<8x32xf32>
    %15 = arith.mulf %0, %14 : vector<8x32xf32>
    %16 = arith.truncf %15 : vector<8x32xf32> to vector<8x32xbf16>
    %17 = vector.broadcast %13 : vector<128x1xf32> to vector<128x32xf32>
    %18 = arith.mulf %1, %17 : vector<128x32xf32>
    %19 = arith.truncf %18 : vector<128x32xf32> to vector<128x32xbf16>
    %cst_6 = arith.constant dense<0.000000e+00> : vector<8x128xf32>
    %20 = tpu.matmul %16, %19, %cst_6 {dimension_numbers = #tpu.dot_dimension_numbers<[1], [1], [0], [0], [0, 0, 1, 0], [], []>} : vector<8x32xbf16>, vector<128x32xbf16>, vector<8x128xf32> -> vector<8x128xf32>
    %c128_i32 = arith.constant 128 : i32
    %21 = arith.muli %arg1, %c128_i32 : i32
    %22 = tpu.iota {dimensions = array<i32: 1>} : vector<8x128xi32>
    %23 = vector.broadcast %21 : i32 to vector<8x128xi32>
    %24 = arith.addi %23, %22 : vector<8x128xi32>
    %c0_7 = arith.constant 0 : index
    %c0_8 = arith.constant 0 : index
    %25 = vector.load %arg4[%c0_7, %c0_8] : memref<8x1xi32, #tpu.memory_space<vmem>>, vector<8x1xi32>
    %cst_9 = arith.constant 3.000000e+01 : f32
    %26 = vector.broadcast %cst_9 : f32 to vector<8x128xf32>
    %27 = arith.mulf %26, %20 : vector<8x128xf32>
    %28 = vector.broadcast %25 : vector<8x1xi32> to vector<8x128xi32>
    %29 = arith.cmpi eq, %24, %28 : vector<8x128xi32>
    %cst_10 = arith.constant 1.200000e+01 : f32
    %30 = vector.broadcast %cst_10 : f32 to vector<8x128xf32>
    %31 = arith.subf %27, %30 : vector<8x128xf32>
    %32 = arith.select %29, %31, %27 : vector<8x128xi1>, vector<8x128xf32>
    %c0_11 = arith.constant 0 : index
    %c0_12 = arith.constant 0 : index
    %33 = vector.load %arg5[%c0_11, %c0_12] : memref<8x128xf32, #tpu.memory_space<vmem>>, vector<8x128xf32>
    tpu.vector_store %arg5[%c0_11, %c0_12], %32 {strides = array<i32>} : memref<8x128xf32, #tpu.memory_space<vmem>>, vector<8x128xf32>,
    return
  }
  func.func @transform_0(%arg0: i32, %arg1: i32) -> (i32, i32) {
    %c0_i32 = arith.constant 0 : i32
    %c0_i32_0 = arith.constant 0 : i32
    return %arg0, %c0_i32 : i32, i32
  }
  func.func @transform_1(%arg0: i32, %arg1: i32) -> (i32, i32) {
    %c0_i32 = arith.constant 0 : i32
    %c0_i32_0 = arith.constant 0 : i32
    return %arg1, %c0_i32 : i32, i32
  }
  func.func @transform_2(%arg0: i32, %arg1: i32) -> (i32, i32) {
    %c0_i32 = arith.constant 0 : i32
    %c0_i32_0 = arith.constant 0 : i32
    return %arg0, %c0_i32 : i32, i32
  }
  func.func @transform_3(%arg0: i32, %arg1: i32) -> (i32, i32) {
    %c0_i32 = arith.constant 0 : i32
    return %arg0, %arg1 : i32, i32
  }
}

</mosaic_0001>

<bundles_post_ra>
// kernel: tpu_custom_call.1
= control target key start
LH: loop header
LB: loop body
LE: loop exit
PB: predicated region body
PF: predicated region fallthrough
CT: control target
= control target key end

     0   :  { %8 = vsyncpa [#allocation3], 0  ;;  %s1058_s0 = inlined_call_operand.vmem [shape: f32[8,32], index: 0, kind: input, shape index: {}]   ;;  %s1059_s1 = inlined_call_operand.vmem [shape: f32[256,32], index: 1, kind: input, shape index: {}]   ;;  %s1060_s2 = inlined_call_operand.vmem [shape: s32[8,1], index: 2, kind: input, shape index: {}]   ;;  %s1061_s3 = inlined_call_operand.hbm [shape: f32[8,256], index: 3, kind: output, shape index: {}]  }
   0x1   :  { %10 = vsyncpa [#allocation3 + $0x1], 0  ;;  %s804_s12 = smov 0   ;;  %s806_s13 = smov 0  }
   0x2   :  { %s808_s14 = smov 0   ;;  %s810_s15 = smov 0  }
   0x3   :  { %s812_s16 = smov 0   ;;  %s814_s17 = smov 0  }
   0x4 LB: > { %s562_s18 = sadd.s32 4294967295, %s778_s17   ;;  %s563_s19 = sadd.s32 4294967294, %s778_s17   ;;  %s778_s17 = sphi %s814_s17, %s16_s17   ;;  %s774_s16 = sphi %s812_s16, %s1068_s16   ;;  %s770_s15 = sphi %s810_s15, %s1067_s15   ;;  %s766_s14 = sphi %s808_s14, %s1066_s14   ;;  %s762_s13 = sphi %s806_s13, %s1065_s13   ;;  %s758_s12 = sphi %s804_s12, %s1064_s12  }
   0x5   : > { %s25_s20 = sadd.s32 1, %s774_s16  ;;  %s115_s21 = sadd.s32 1, %s766_s14 }
   0x6   : > { %p26_p0 = scmp.ge.s32.totalorder %s25_s20, 2  ;;  %p125_p1 = scmp.ne.s32.totalorder %s766_s14, %s762_s13 }
   0x7   : > { %p126_p2 = scmp.eq.s32.totalorder %s562_s18, 1  ;;  %p131_p3 = scmp.ne.s32.totalorder %s762_s13, %s758_s12 }
   0x8   : > { %s1070_s20 = smov (%p26_p0, %s25_s20), 0  ;;  %p132_p5 = scmp.eq.s32.totalorder %s563_s19, 1 }
   0x9   : > { %p844_p4 = por %p126_p2, %p125_p1  ;;  %s111_s23 = ssub.s32 %s774_s16, %s1070_s20 }
   0xa   : > { %p568_p6 = scmp.ge.s32.totalorder %s778_s17, 1  ;;  %p113_p7 = scmp.eq.s32.totalorder %s111_s23, 0 }
   0xb   : > { %p851_p8 = por %p132_p5, %p131_p3  ;;  %p173_p9 = scmp.lt.s32.totalorder %s778_s17, 3 }
   0xc   : > { %s857_s25 = scalar_select %p113_p7, %s766_s14, %s115_s21  }
   0xd   : > { %p174_p10 = pnand %p568_p6, %p173_p9 }
   0xe   : > { %s570_s26 = sshll.u32 (!%p174_p10), %s770_s15, 4  ;;  %s573_s8 = sshll.u32 (!%p174_p10), %s770_s15, 7 }
   0xf   : > { %177 = sbr.rel (%p174_p10) target bundleno = 464 (0x1d0), region = 32  ;;  %p210_p11 = scmp.lt.s32.totalorder (!%p174_p10), %s570_s26, 31 }
  0x10   : > { %s202_s9 = sand.u32 (!%p174_p10), 1, %s762_s13   ;;  %s1012_s23 = scalar_lea.hbm (!%p174_p10), %s1061_s3, %s573_s8 }
  0x11   : > { %s569_s10 = sshll.u32 (!%p174_p10), %s202_s9, 3  ;;  %s448_s15 = scalar_lea.sflag (!%p174_p10), [#allocation3], %s202_s9 }
  0x12   : > { %s204_s11 = scalar_lea.vmem (!%p174_p10), [#allocation2], %s569_s10 }
  0x13   : > { %s463_s18 = sshll.u32 (!%p174_p10), %s204_s11, 4  ;;  %s1014_s18 = int_to_ptr.vmem [resolvable:$true] %s463_s18 }
  0x14   : > { %s1072_s26 = smov (!%p210_p11, %s570_s26), 31  ;;  %vm238_vm0 = vcmask 261120   ;;  %v962_v46 = vld [vmem:[%s1058_s0] sm:$0xff]  ;;  %v780_v47 = vmov 0.0   ;;  %vm781_vm1 = vmmov 0   ;;  %v782_v53 = vmov 0  }
  0x15   : > { %s571_s27 = sshll.u32 %s1072_s26, 3  ;;  %588 = vmatprep.subr.bf16.mxu0 %v780_v47  ;;  %v237_v50 = vmul.f32 %v962_v46, %v962_v46  ;;  %604 = vmatprep.mubr.msk.bf16.mxu0 %vm781_vm1, %v780_v47  ;;  %v438_v52 = vld [vmem:[%s1060_s2] sm:$0xff]  ;;  %s702_s26 = scalar_lea.vmem %s1014_s18, 128 }
  0x16   : > { %s863_s30 = scalar_lea.vmem %s1059_s1, %s571_s27  ;;  %666 = vset.pattern.permute.xlu1 %v782_v53  ;;  %667 = vset.pattern.permute.xlu0 %v782_v53  ;;  %p703_p12 = scmp.ne.s32.totalorder %s1014_s18, %s702_s26 }
  0x17   : > { %v866_v0 = vld [vmem:[%s863_s30 + $0x70] sm:$0xff]  ;;  %v869_v1 = vld [vmem:[%s863_s30 + $0x78] sm:$0xff]  ;;  %v872_v2 = vld [vmem:[%s863_s30 + $0x60] sm:$0xff]  ;;  %v239_v51 = vsel %vm238_vm0, %v237_v50, 0.0  ;;  %s783_s27 = smov [#allocation2]  }
  0x18   : > { %v258_v3 = vmul.f32 %v866_v0, %v866_v0  ;;  %v259_v4 = vmul.f32 %v869_v1, %v869_v1  ;;  %v256_v5 = vmul.f32 %v872_v2, %v872_v2  ;;  %v881_v6 = vld [vmem:[%s863_s30 + $0x68] sm:$0xff]  ;;  %v886_v8 = vld [vmem:[%s863_s30 + $0x58] sm:$0xff]  ;;  %v889_v9 = vld [vmem:[%s863_s30 + $0x50] sm:$0xff]  ;;  %p704_p13 = pnand %p703_p12, %p844_p4  ;;  %s706_s28 = sshll.u32 %s783_s27, 4  ;;  %s707_s28 = int_to_ptr.vmem [resolvable:$false] %s706_s28 }
  0x19   : > { %v257_v7 = vmul.f32 %v881_v6, %v881_v6  ;;  %v255_v14 = vmul.f32 %v886_v8, %v886_v8  ;;  %v254_v15 = vmul.f32 %v889_v9, %v889_v9  ;;  %v900_v16 = vld [vmem:[%s863_s30 + $0x48] sm:$0xff]  ;;  %v903_v17 = vld [vmem:[%s863_s30 + $0x40] sm:$0xff]  ;;  %v912_v22 = vld [vmem:[%s863_s30 + $0x38] sm:$0xff]  ;;  %s708_s29 = scalar_lea.vmem %s707_s28, 256  ;;  %p709_p1 = scmp.lt.s32.totalorder %s1014_s18, %s707_s28 }
  0x1a   : > { %v302_v10 = vsel %vm238_vm0, %v258_v3, 0.0  ;;  %v296_v11 = vsel %vm238_vm0, %v256_v5, 0.0  ;;  %v305_v12 = vsel %vm238_vm0, %v259_v4, 0.0  ;;  %v253_v20 = vmul.f32 %v900_v16, %v900_v16  ;;  %v915_v23 = vld [vmem:[%s863_s30 + $0x30] sm:$0xff]  ;;  %v924_v28 = vld [vmem:[%s863_s30 + $0x28] sm:$0xff]  ;;  %v927_v29 = vld [vmem:[%s863_s30 + $0x20] sm:$0xff]  ;;  %p705_p0 = pneg %p704_p13  ;;  %p710_p2 = scmp.lt.s32.totalorder %s708_s29, %s702_s26 }
  0x1b   : > { %303 = vadd.xlane.f32.xlu0 %v302_v10  ;;  %297 = vadd.xlane.f32.xlu1 %v296_v11  ;;  %v299_v13 = vsel %vm238_vm0, %v257_v7, 0.0  ;;  %v293_v18 = vsel %vm238_vm0, %v255_v14, 0.0  ;;  %v290_v19 = vsel %vm238_vm0, %v254_v15, 0.0  ;;  %v252_v21 = vmul.f32 %v903_v17, %v903_v17  ;;  %v936_v34 = vld [vmem:[%s863_s30 + $0x18] sm:$0xff]  ;;  %v939_v35 = vld [vmem:[%s863_s30 + $0x10] sm:$0xff]  ;;  %v948_v40 = vld [vmem:[%s863_s30 + $0x8] sm:$0xff] }
  0x1c   : > { %v287_v24 = vsel %vm238_vm0, %v253_v20, 0.0  ;;  %v251_v26 = vmul.f32 %v912_v22, %v912_v22  ;;  %v250_v27 = vmul.f32 %v915_v23, %v915_v23  ;;  %v249_v32 = vmul.f32 %v924_v28, %v924_v28  ;;  %v951_v41 = vld [vmem:[%s863_s30] sm:$0xff]  ;;  %p711_p3 = por %p710_p2, %p709_p1 }
  0x1d   : > { %v284_v25 = vsel %vm238_vm0, %v252_v21, 0.0  ;;  %v248_v33 = vmul.f32 %v927_v29, %v927_v29  ;;  %v247_v38 = vmul.f32 %v936_v34, %v936_v34  ;;  %v246_v39 = vmul.f32 %v939_v35, %v939_v35 }
  0x1e   : > { %v281_v30 = vsel %vm238_vm0, %v251_v26, 0.0  ;;  %v278_v31 = vsel %vm238_vm0, %v250_v27, 0.0  ;;  %v275_v36 = vsel %vm238_vm0, %v249_v32, 0.0  ;;  %v245_v42 = vmul.f32 %v948_v40, %v948_v40  ;;  %p712_p5 = pnand %p711_p3, %p705_p0 }
  0x1f   : > { %306 = vadd.xlane.f32.xlu0 %v305_v12  ;;  %300 = vadd.xlane.f32.xlu1 %v299_v13  ;;  %v272_v37 = vsel %vm238_vm0, %v248_v33, 0.0  ;;  %v269_v43 = vsel %vm238_vm0, %v247_v38, 0.0  ;;  %v266_v44 = vsel %vm238_vm0, %v246_v39, 0.0  ;;  %v244_v45 = vmul.f32 %v951_v41, %v951_v41 }
  0x20   : > { %v263_v48 = vsel %vm238_vm0, %v245_v42, 0.0 }
  0x21   : > { %v260_v49 = vsel %vm238_vm0, %v244_v45, 0.0 }
  0x23   : > { %294 = vadd.xlane.f32.xlu1 %v293_v18  ;;  %291 = vadd.xlane.f32.xlu0 %v290_v19 }
  0x27   : > { %288 = vadd.xlane.f32.xlu1 %v287_v24  ;;  %285 = vadd.xlane.f32.xlu0 %v284_v25 }
  0x2b   : > { %282 = vadd.xlane.f32.xlu1 %v281_v30  ;;  %279 = vadd.xlane.f32.xlu0 %v278_v31 }
  0x2f   : > { %276 = vadd.xlane.f32.xlu1 %v275_v36  ;;  %273 = vadd.xlane.f32.xlu0 %v272_v37 }
  0x33   : > { %270 = vadd.xlane.f32.xlu1 %v269_v43  ;;  %267 = vadd.xlane.f32.xlu0 %v266_v44 }
  0x37   : > { %264 = vadd.xlane.f32.xlu1 %v263_v48  ;;  %261 = vadd.xlane.f32.xlu0 %v260_v49 }
  0x3b   : > { %240 = vadd.xlane.f32.xlu0 %v239_v51 }
  0x48   : > { %441 = vperm.xlu1 %666, %v438_v52  }
  0xa4   : > { %v304_v54 = vpop.xlane.xlu0 %303  ;;  %v298_v55 = vpop.xlane.xlu1 %297 }
  0xa5   : > { %v322_v56 = vmax.f32 %v304_v54, 1e-24  ;;  %v320_v58 = vmax.f32 %v298_v55, 1e-24 }
  0xa7   : > { %668 = vrsqrt.f32 %v322_v56 }
  0xa8   : > { %v307_v57 = vpop.xlane.xlu0 %306  ;;  %v301_v59 = vpop.xlane.xlu1 %300 }
  0xa9   : > { %v323_v60 = vmax.f32 %v307_v57, 1e-24  ;;  %v321_v61 = vmax.f32 %v301_v59, 1e-24 }
  0xab   : > { %670 = vrsqrt.f32 %v323_v60 }
  0xac   : > { %672 = vrsqrt.f32 %v320_v58  ;;  %v295_v62 = vpop.xlane.xlu1 %294  ;;  %v292_v63 = vpop.xlane.xlu0 %291 }
  0xad   : > { %674 = vrsqrt.f32 %v321_v61  ;;  %v319_v3 = vmax.f32 %v295_v62, 1e-24  ;;  %v318_v4 = vmax.f32 %v292_v63, 1e-24 }
  0xaf   : > { %676 = vrsqrt.f32 %v319_v3 }
  0xb0   : > { %678 = vrsqrt.f32 %v318_v4  ;;  %v289_v5 = vpop.xlane.xlu1 %288  ;;  %v286_v7 = vpop.xlane.xlu0 %285 }
  0xb1   : > { %v317_v11 = vmax.f32 %v289_v5, 1e-24  ;;  %v316_v12 = vmax.f32 %v286_v7, 1e-24 }
  0xb3   : > { %680 = vrsqrt.f32 %v317_v11 }
  0xb4   : > { %v669_v10 = vpop.eup %668  ;;  %682 = vrsqrt.f32 %v316_v12  ;;  %v283_v21 = vpop.xlane.xlu1 %282 }
  0xb5   : > { %v356_v15 = vmul.f32 %v669_v10, %v866_v0  ;;  %v280_v24 = vpop.xlane.xlu0 %279  ;;  %v315_v30 = vmax.f32 %v283_v21, 1e-24 }
  0xb6   : > { %v314_v0 = vmax.f32 %v280_v24, 1e-24 }
  0xb7   : > { %684 = vrsqrt.f32 %v315_v30 }
  0xb8   : > { %v671_v13 = vpop.eup %670  ;;  %686 = vrsqrt.f32 %v314_v0  ;;  %v277_v37 = vpop.xlane.xlu1 %276 }
  0xb9   : > { %v673_v14 = vpop.eup %672  ;;  %v357_v18 = vmul.f32 %v671_v13, %v869_v1  ;;  %v274_v38 = vpop.xlane.xlu0 %273 }
  0xba   : > { %v675_v19 = vpop.eup %674  ;;  %v354_v26 = vmul.f32 %v673_v14, %v872_v2  ;;  %v312_v43 = vmax.f32 %v274_v38, 1e-24 }
  0xbb   : > { %v365_v20 = vpack.c.bf16 %v357_v18, %v356_v15  ;;  %v355_v27 = vmul.f32 %v675_v19, %v881_v6  ;;  %v313_v6 = vmax.f32 %v277_v37, 1e-24 }
  0xbc   : > { %v677_v31 = vpop.eup %676  ;;  %v271_v48 = vpop.xlane.xlu1 %270 }
  0xbd   : > { %v391_v25 = vsel %vm238_vm0, %v365_v20, 0  ;;  %v679_v32 = vpop.eup %678  ;;  %v364_v1 = vpack.c.bf16 %v355_v27, %v354_v26  ;;  %v353_v36 = vmul.f32 %v677_v31, %v886_v8  ;;  %688 = vrsqrt.f32 %v313_v6  ;;  %v268_v49 = vpop.xlane.xlu0 %267 }
  0xbe   : > { %589 = vmatpush3.bf16.xpose.msra.mxu0 %v391_v25  ;;  %v352_v33 = vmul.f32 %v679_v32, %v889_v9  ;;  %690 = vrsqrt.f32 %v312_v43  ;;  %v311_v50 = vmax.f32 %v271_v48, 1e-24  ;;  %v310_v53 = vmax.f32 %v268_v49, 1e-24 }
  0xbf   : > { %590 = vmatprep.subr.bf16.mxu0 %v780_v47  ;;  %v388_v2 = vsel %vm238_vm0, %v364_v1, 0  ;;  %v434_v25 = vlaneseq }
  0xc0   : > { %v681_v39 = vpop.eup %680  ;;  %v363_v42 = vpack.c.bf16 %v353_v36, %v352_v33  ;;  %692 = vrsqrt.f32 %v311_v50  ;;  %v265_v57 = vpop.xlane.xlu1 %264 }
  0xc1   : > { %v683_v44 = vpop.eup %682  ;;  %v351_v8 = vmul.f32 %v681_v39, %v900_v16  ;;  %694 = vrsqrt.f32 %v310_v53  ;;  %v262_v16 = vpop.xlane.xlu0 %261  ;;  %v309_v58 = vmax.f32 %v265_v57, 1e-24  ;;  %v435_v26 = vand.u32 127, %v434_v25 }
  0xc2   : > { %v385_v45 = vsel %vm238_vm0, %v363_v42, 0  ;;  %v350_v9 = vmul.f32 %v683_v44, %v903_v17  ;;  %v308_v61 = vmax.f32 %v262_v16, 1e-24 }
  0xc3   : > { %696 = vrsqrt.f32 %v309_v58 }
  0xc4   : > { %v685_v51 = vpop.eup %684  ;;  %v362_v52 = vpack.c.bf16 %v351_v8, %v350_v9  ;;  %698 = vrsqrt.f32 %v308_v61  ;;  %v442_v27 = vpop.permute.xlu1 %441 }
  0xc5   : > { %v687_v54 = vpop.eup %686  ;;  %v349_v17 = vmul.f32 %v685_v51, %v912_v22  ;;  %v241_v22 = vpop.xlane.xlu0 %240 }
  0xc6   : > { %591 = vmatpush3.bf16.xpose.msra.mxu0 %v388_v2  ;;  %v382_v55 = vsel %vm238_vm0, %v362_v52, 0  ;;  %v348_v56 = vmul.f32 %v687_v54, %v915_v23  ;;  %v242_v10 = vmax.f32 %v241_v22, 1e-24 }
  0xc7   : > { %592 = vmatprep.subr.bf16.mxu0 %v780_v47 }
  0xc8   : > { %v361_v60 = vpack.c.bf16 %v349_v17, %v348_v56  ;;  %700 = vrsqrt.f32 %v242_v10 }
  0xca   : > { %v689_v59 = vpop.eup %688  ;;  %v379_v63 = vsel %vm238_vm0, %v361_v60, 0 }
  0xcb   : > { %v691_v62 = vpop.eup %690  ;;  %v347_v23 = vmul.f32 %v689_v59, %v924_v28 }
  0xcc   : > { %v346_v3 = vmul.f32 %v691_v62, %v927_v29 }
  0xcd   : > { %v693_v4 = vpop.eup %692 }
  0xce   : > { %593 = vmatpush3.bf16.xpose.msra.mxu0 %v385_v45  ;;  %v360_v5 = vpack.c.bf16 %v347_v23, %v346_v3  ;;  %v695_v7 = vpop.eup %694  ;;  %v345_v13 = vmul.f32 %v693_v4, %v936_v34 }
  0xcf   : > { %594 = vmatprep.subr.bf16.mxu0 %v780_v47  ;;  %v344_v12 = vmul.f32 %v695_v7, %v939_v35 }
  0xd0   : > { %v376_v11 = vsel %vm238_vm0, %v360_v5, 0  ;;  %v697_v14 = vpop.eup %696 }
  0xd1   : > { %v359_v28 = vpack.c.bf16 %v345_v13, %v344_v12  ;;  %v699_v29 = vpop.eup %698  ;;  %v343_v19 = vmul.f32 %v697_v14, %v948_v40 }
  0xd2   : > { %v342_v18 = vmul.f32 %v699_v29, %v951_v41  ;;  %v436_v41 = vstv %s573_s8 }
  0xd3   : > { %v373_v15 = vsel %vm238_vm0, %v359_v28, 0  ;;  %v437_v40 = vadd.s32 %v436_v41, %v435_v26 }
  0xd4   : > { %v358_v35 = vpack.c.bf16 %v343_v19, %v342_v18 }
  0xd5   : > { %v701_v34 = vpop.eup %700  ;;  %vm443_vm2 = vcmp.eq.s32.totalorder %v437_v40, %v442_v27 }
  0xd6   : > { %595 = vmatpush3.bf16.xpose.msra.mxu0 %v382_v55  ;;  %v370_v20 = vsel %vm238_vm0, %v358_v35, 0  ;;  %v340_v21 = vmul.f32 %v701_v34, %v962_v46 }
  0xd7   : > { %596 = vmatprep.subr.bf16.mxu0 %v780_v47 }
  0xd8   : > { %v341_v24 = vpack.c.bf16 %v340_v21, %v340_v21 }
  0xde   : > { %597 = vmatpush3.bf16.xpose.msra.mxu0 %v379_v63 }
  0xdf   : > { %598 = vmatprep.subr.bf16.mxu0 %v780_v47 }
  0xe6   : > { %599 = vmatpush3.bf16.xpose.msra.mxu0 %v376_v11 }
  0xe7   : > { %600 = vmatprep.subr.bf16.mxu0 %v780_v47 }
  0xee   : > { %601 = vmatpush3.bf16.xpose.msra.mxu0 %v373_v15 }
  0xef   : > { %602 = vmatprep.subr.bf16.mxu0 %v780_v47 }
  0xf6   : > { %603 = vmatpush3.bf16.xpose.msra.mxu0 %v370_v20 }
  0xfd   : > { %605 = vmatmul.mubr.msk.bf16.vlgmr.msra.gmra.mxu0 %vm238_vm0, %v341_v24 }
 0x1bd   : > { %v427_v30 = vpop.f32.mrf.mxu0 }
 0x1be   : > { %v439_v47 = vmul.f32 30.0, %v427_v30 }
 0x1bf   : > { %v606_v31 = vpop.f32.mrf.mxu0 }
 0x1c0   : > { %v574_v46 = vadd.f32 -12.0, %v439_v47 }
 0x1c1   : > { %v430_v0 = vpop.f32.mrf.mxu0 }
 0x1c2   : > { %v445_v32 = vsel %vm443_vm2, %v574_v46, %v439_v47 }
 0x1c3   : > { %v607_v1 = vpop.f32.mrf.mxu0  ;;  %446 = vst [vmem:[%s204_s11] sm:$0xff] %v445_v32 }
 0x1c4   : > { %715 = shalt.err (!%p712_p5)
}
 0x1c5   : > { %s716_s30 = scalar_lea.hbm %s1012_s23, 128  ;;  %s720_s6 = scalar_lea.hbm %s1061_s3, 256 }
 0x1c6   : > { %p717_p6 = scmp.ne.s32.totalorder %s1012_s23, %s716_s30  ;;  %p721_p10 = scmp.lt.s32.totalorder %s1012_s23, %s1061_s3 }
 0x1c7   : > { %p722_p11 = scmp.lt.s32.totalorder %s720_s6, %s716_s30 }
 0x1c8   : > { %p718_p7 = pnand %p717_p6, %p844_p4 }
 0x1c9   : > { %p723_p12 = por %p722_p11, %p721_p10 }
 0x1ca   : > { %p719_p9 = pneg %p718_p7 }
 0x1cc   : > { %p724_p13 = pnand %p723_p12, %p719_p9 }
 0x1ce   : > { %727 = shalt.err (!%p724_p13)
}
 0x1cf   : > { %608 = dma.vmem_to_hbm [thread:$0]  (%p844_p4), %s1014_s18, 128, %s1012_s23, %s448_s15  }
 0x1d0 PF: > { %p614_p0 = scmp.ge.s32.totalorder %s778_s17, 2  ;;  %s475_s9 = sand.u32 1, %s758_s12  }
 0x1d1   : > { %s476_s10 = scalar_lea.sflag [#allocation3], %s475_s9 }
 0x1d2   : > { %p611_p1 = pnand %p614_p0, %p851_p8 }
 0x1d4   : > { %p612_p2 = pneg %p611_p1 }
 0x1d6   : > { %753 = dma.done.wait (%p612_p2), %s476_s10, 128  }
 0x1d7   : > { %755 = vsyncadd (%p612_p2), %s476_s10, 4294967168  ;;  %s16_s17 = sadd.s32 1, %s778_s17   ;;  %s1064_s12 = smov %s762_s13 }
 0x1d8   : > { %p13_p3 = scmp.ge.s32.totalorder %s16_s17, 4   ;;  %s1065_s13 = smov %s766_s14 }
 0x1d9   : > { %s1066_s14 = smov %s857_s25  ;;  %s1067_s15 = smov %s774_s16 }
 0x1da   : > { %s1068_s16 = smov %s1070_s20  ;;  %15 = sbr.rel (!%p13_p3) target bundleno = 4 (0x4), region = 73 }
 0x1df   :  { %481 = vsyncpa [#allocation3], 1 }
 0x1e0   :  { %483 = vsyncpa [#allocation3 + $0x1], 1 }

</bundles_post_ra>
